<compile_context>
chip_gen: v5e
topology: v5e:2x2
jax: 0.10.0
libtpu: 0.0.40
codegen_flags: <defaults>
</compile_context>

<pallas_src>
import functools

import jax
import jax.numpy as jnp
from jax.experimental import pallas as pl
from jax.experimental.pallas import tpu as pltpu


def _round_up(x, m):
    return (x + m - 1) // m * m


def _vmem_capacity_bytes():
    """Best-effort query of per-core VMEM capacity; conservative fallback."""
    try:
        info = pltpu.get_tpu_info()
        for attr in ("vmem_capacity_bytes", "vmem_size_bytes", "vmem_bytes"):
            v = getattr(info, attr, None)
            if v:
                return int(v)
    except Exception:
        pass
    return 64 << 20  # assume the smallest (v7x-class) VMEM if the query fails


def _pooling_kernel(len_ref, seq_ref, out_ref, *, mode):
    # len_ref : VMEM int32[TB, 1]    valid length per row
    # seq_ref : VMEM dtype[TB, T, E] block of sequence embeddings
    # out_ref : VMEM dtype[TB, E]    lane-dense pooled output
    tb, t, _ = seq_ref.shape
    seq = seq_ref[...]                       # keep input dtype; no full-block upcast
    lengths = len_ref[...]                   # (TB, 1) int32

    # mask[b, ti, 0] = ti < lengths[b]  (broadcasts over the embedding dim)
    t_idx = jax.lax.broadcasted_iota(jnp.int32, (tb, t, 1), 1)
    mask = t_idx < lengths[:, None, :]       # (TB, T, 1) bool

    if mode == 'max':
        # torch-exact: hist = seq - (1 - mask) * 1e9  (length-0 rows -> max(seq) - 1e9)
        big = jnp.asarray(1e9, dtype=seq.dtype)
        hist = jnp.where(mask, seq, seq - big)
        out_ref[...] = jnp.max(hist, axis=1).astype(out_ref.dtype)
    else:
        # Widen inside the reduction: no materialized f32 copy of the block.
        pooled = jnp.sum(jnp.where(mask, seq, jnp.zeros((), seq.dtype)),
                         axis=1, dtype=jnp.float32)          # (TB, E) f32 accumulate
        if mode == 'mean':
            inv = pl.reciprocal(lengths.astype(jnp.float32) + 1e-8, approx=True)
            pooled = pooled * inv                            # (TB,1) bcast over E
        out_ref[...] = pooled.astype(out_ref.dtype)


def sequence_pooling(seq_value, seq_len, mode='mean'):
    """Pallas implementation of SequencePoolingLayer.forward (supports_masking=False).

    seq_value: (B, T, E) float32 / bfloat16
    seq_len:   (B, 1)    int
    returns:   (B, 1, E) same dtype as seq_value
    """
    if mode not in ('sum', 'mean', 'max'):
        raise ValueError('parameter mode should in [sum, mean, max]')
    B, T, E = seq_value.shape
    dtype = seq_value.dtype
    itemsize = jnp.dtype(dtype).itemsize

    lengths = seq_len.reshape(B, 1).astype(jnp.int32)

    # ---- generation-aware VMEM budget --------------------------------------
    cap = _vmem_capacity_bytes()
    if cap >= (128 << 20):          # v5e / v6e: 128 MiB physical VMEM
        vmem_budget = 80 << 20
        vmem_limit = 100 << 20
    else:                           # v7x-class: 64 MiB physical VMEM
        vmem_budget = 36 << 20
        vmem_limit = 56 << 20

    # ---- per-row VMEM footprint with real tile padding ----------------------
    E_pad = _round_up(E, 128)                        # lane padding
    pack = max(1, 32 // (itemsize * 8)) * 8          # sublane pack: f32->8, bf16->16, i8->32
    T_pad = _round_up(T, pack)
    per_row = (
        2 * T_pad * E_pad * itemsize     # double-buffered input block
        + 2 * T_pad * E_pad * 4          # in-kernel temporaries (select / widened), conservative
        + T_pad * 128 * 4                # iota / mask vregs
        + 2 * E_pad * itemsize           # double-buffered output block
        + 2 * 128 * 4                    # double-buffered lengths block (lane-padded)
    )
    tb_cap = max(8, (vmem_budget // per_row) // 8 * 8)

    # Keep >= ~4 grid steps so the pipeline hides prologue/epilogue DMA and both
    # TensorCores on v7x get work; tb stays a multiple of 8 sublanes.
    min_steps = 4
    tb = int(max(8, min(tb_cap, _round_up(pl.cdiv(B, min_steps), 8))))

    grid = (pl.cdiv(B, tb),)   # partial tail block handled by Pallas; no jnp.pad HBM copy
    kernel = functools.partial(_pooling_kernel, mode=mode)

    cost = pl.CostEstimate(
        flops=2 * B * T * E,
        transcendentals=0,
        bytes_accessed=itemsize * (B * T * E + B * E) + 4 * B,
    )

    # TODO(synk): when E < 128 (typical CTR embedding dims), concatenate several
    # embedding fields along E in the caller and pool once, so the lane dimension
    # presented to the kernel is dense; a single small-E field leaves lanes idle.

    out = pl.pallas_call(
        kernel,
        out_shape=jax.ShapeDtypeStruct((B, E), dtype),
        grid_spec=pltpu.PrefetchScalarGridSpec(
            num_scalar_prefetch=0,
            grid=grid,
            in_specs=[
                pl.BlockSpec((tb, 1), lambda b: (b, 0)),        # lengths
                pl.BlockSpec((tb, T, E), lambda b: (b, 0, 0)),  # seq_value
            ],
            out_specs=pl.BlockSpec((tb, E), lambda b: (b, 0)),  # lane-dense output
        ),
        compiler_params=pltpu.CompilerParams(
            dimension_semantics=("parallel",),   # shard batch blocks across TCs
            vmem_limit_bytes=vmem_limit,
        ),
        cost_estimate=cost,
    )(lengths, seq_value)

    return out.reshape(B, 1, E)


def _reference(seq_value, seq_len, mode):
    # Pure-JAX reference replicating the PyTorch semantics.
    B, T, E = seq_value.shape
    lengths = seq_len.reshape(B, 1).astype(jnp.float32)
    mask = (jnp.arange(T)[None, :] < lengths).astype(jnp.float32)   # (B, T)
    mask = mask[:, :, None]                                          # (B, T, 1)
    if mode == 'max':
        hist = seq_value - (1.0 - mask) * 1e9
        return jnp.max(hist, axis=1, keepdims=True)
    hist = jnp.sum(seq_value * mask, axis=1)                         # (B, E)
    if mode == 'mean':
        hist = hist / (lengths + 1e-8)
    return hist[:, None, :]


if __name__ == "__main__":
    key = jax.random.PRNGKey(0)
    B, T, E = 2, 8, 32
    k1, _ = jax.random.split(key)
    seq_value = jax.random.normal(k1, (B, T, E), dtype=jnp.float32)
    seq_len = jnp.array([[3], [8]], dtype=jnp.int32)                 # (B, 1)

    ok = True
    for mode in ('sum', 'mean', 'max'):
        out = jax.block_until_ready(sequence_pooling(seq_value, seq_len, mode=mode))
        ref = _reference(seq_value, seq_len, mode)
        # mean uses the EUP approx reciprocal -> slightly looser tolerance
        tol = 2e-3 if mode == 'mean' else 1e-5
        if out.shape != (B, 1, E) or not jnp.allclose(out, ref, atol=tol, rtol=tol):
            ok = False
            print(f"MISMATCH mode={mode}: max abs err "
                  f"{float(jnp.max(jnp.abs(out - ref)))}")

    if ok:
        print("KERNEL_OK")
</pallas_src>

<mosaic_0001>
module attributes {stable_mosaic.version = 11 : i64} {
  func.func @_pooling_kernel(%arg0: i32, %arg1: memref<8x1xi32, #tpu.memory_space<vmem>>, %arg2: memref<8x8x32xf32, #tpu.memory_space<vmem>>, %arg3: memref<8x32xf32, #tpu.memory_space<vmem>>) attributes {dimension_semantics = [#tpu.dimension_semantics<parallel>], iteration_bounds = array<i64: 1>, scalar_prefetch = 0 : i64, scratch_operands = 0 : i64, tpu.core_type = #tpu.core_type<tc>, window_params = [{transform_indices = @transform_0, window_bounds = array<i64: 8, 1>}, {transform_indices = @transform_1, window_bounds = array<i64: 8, 8, 32>}, {transform_indices = @transform_2, window_bounds = array<i64: 8, 32>}]} {
    %c0 = arith.constant 0 : index
    %c0_0 = arith.constant 0 : index
    %c0_1 = arith.constant 0 : index
    %0 = vector.load %arg2[%c0, %c0_0, %c0_1] : memref<8x8x32xf32, #tpu.memory_space<vmem>>, vector<8x8x32xf32>
    %c0_2 = arith.constant 0 : index
    %c0_3 = arith.constant 0 : index
    %1 = vector.load %arg1[%c0_2, %c0_3] : memref<8x1xi32, #tpu.memory_space<vmem>>, vector<8x1xi32>
    %2 = tpu.iota {dimensions = array<i32: 1>} : vector<8x8x1xi32>
    %3 = vector.shape_cast %1 : vector<8x1xi32> to vector<8x1x1xi32>
    %4 = vector.broadcast %3 : vector<8x1x1xi32> to vector<8x8x1xi32>
    %5 = arith.cmpi slt, %2, %4 : vector<8x8x1xi32>
    %cst = arith.constant 0.000000e+00 : f32
    %6 = vector.shape_cast %5 : vector<8x8x1xi1> to vector<8x8x1xi1>
    %7 = vector.broadcast %6 : vector<8x8x1xi1> to vector<8x8x32xi1>
    %8 = vector.broadcast %cst : f32 to vector<8x8x32xf32>
    %9 = arith.select %7, %0, %8 : vector<8x8x32xi1>, vector<8x8x32xf32>
    %cst_4 = arith.constant dense<0.000000e+00> : vector<8x32xf32>
    %10 = vector.multi_reduction <add>, %9, %cst_4 [1] : vector<8x8x32xf32> to vector<8x32xf32>
    %c0_5 = arith.constant 0 : index
    %c0_6 = arith.constant 0 : index
    %11 = vector.load %arg3[%c0_5, %c0_6] : memref<8x32xf32, #tpu.memory_space<vmem>>, vector<8x32xf32>
    tpu.vector_store %arg3[%c0_5, %c0_6], %10 {strides = array<i32>} : memref<8x32xf32, #tpu.memory_space<vmem>>, vector<8x32xf32>,
    return
  }
  func.func @transform_0(%arg0: i32) -> (i32, i32) {
    %c0_i32 = arith.constant 0 : i32
    %c0_i32_0 = arith.constant 0 : i32
    return %arg0, %c0_i32 : i32, i32
  }
  func.func @transform_1(%arg0: i32) -> (i32, i32, i32) {
    %c0_i32 = arith.constant 0 : i32
    %c0_i32_0 = arith.constant 0 : i32
    %c0_i32_1 = arith.constant 0 : i32
    return %arg0, %c0_i32, %c0_i32_0 : i32, i32, i32
  }
  func.func @transform_2(%arg0: i32) -> (i32, i32) {
    %c0_i32 = arith.constant 0 : i32
    %c0_i32_0 = arith.constant 0 : i32
    return %arg0, %c0_i32 : i32, i32
  }
}

</mosaic_0001>

<bundles_post_ra>
// kernel: tpu_custom_call.1
= control target key start
LH: loop header
LB: loop body
LE: loop exit
PB: predicated region body
PF: predicated region fallthrough
CT: control target
= control target key end

     0   :  { %7 = vsyncpa [#allocation3], 0  ;;  %s313_s0 = inlined_call_operand.vmem [shape: s32[2,1], index: 0, kind: input, shape index: {}]   ;;  %s314_s1 = inlined_call_operand.hbm [shape: f32[2,8,32], index: 1, kind: input, shape index: {}]   ;;  %s315_s2 = inlined_call_operand.hbm [shape: f32[2,32], index: 2, kind: output, shape index: {}]  }
   0x1   :  { %8 = vsyncpa [#allocation4], 0 }
   0x2   :  { %14 = vsyncadd [#allocation3], 768  ;;  %s15_s11 = sshll.u32 %s314_s1, 4  ;;  %s272_s12 = smov [#allocation2]   ;;  %s16_s11 = int_to_ptr.hbm [resolvable:$true] %s15_s11 }
   0x3   :  { %s17_s13 = sshll.u32 %s272_s12, 4  ;;  %s273_s14 = smov 128   ;;  %s18_s13 = int_to_ptr.vmem [resolvable:$true] %s17_s13 }
   0x4   :  { %s274_s15 = smov 8  }
   0x5   :  { %23 = dma.hbm_to_vmem [thread:$0]  %s16_s11, 256, %s18_s13, [#allocation3], %s273_s14, %s273_s14, %s274_s15  }
   0x6   :  { %268 = dma.done.wait [#allocation3], 1024  }
   0x7   :  { %269 = vsyncadd [#allocation3], 4294966272  ;;  %v275_v0 = vmov 0   ;;  %v37_v1 = vlaneseq  ;;  %v36_v3 = vld [vmem:[%s313_s0] sm:$0xff]  ;;  %vm110_vm9 = vcmask 261120   ;;  %v33_v34 = vld [vmem:[#allocation2 + $0x28] sm:$0xff] }
   0x8   :  { %217 = vset.pattern.permute.xlu0 %v275_v0  ;;  %218 = vset.pattern.permute.xlu1 %v275_v0  ;;  %v46_v4 = vperm.slane %v36_v3, 0  ;;  %v40_v5 = vrot.slane %v36_v3, 2  ;;  %v39_v6 = vrot.slane %v36_v3, 1  ;;  %v41_v7 = vrot.slane %v36_v3, 3  ;;  %v32_v28 = vld [vmem:[#allocation2 + $0x20] sm:$0xff]  ;;  %v30_v35 = vld [vmem:[#allocation2 + $0x10] sm:$0xff] }
   0x9   :  { %219 = vset.pattern.permute.xlu2 %v275_v0  ;;  %v38_v2 = vshrl.u32 %v37_v1, 7  ;;  %v42_v8 = vrot.slane %v36_v3, 4  ;;  %v43_v11 = vrot.slane %v36_v3, 5  ;;  %v44_v16 = vrot.slane %v36_v3, 6  ;;  %v28_v31 = vld [vmem:[#allocation2] sm:$0xff]  ;;  %v29_v48 = vld [vmem:[#allocation2 + $0x8] sm:$0xff] }
   0xa   :  { %v48_v9 = vperm.slane %v40_v5, 0  ;;  %v47_v10 = vperm.slane %v39_v6, 0  ;;  %v49_v14 = vperm.slane %v41_v7, 0  ;;  %v45_v19 = vrot.slane %v36_v3, 7  ;;  %v31_v53 = vld [vmem:[#allocation2 + $0x18] sm:$0xff] }
   0xb   :  { %vm54_vm0 = vcmp.lt.s32.totalorder %v38_v2, %v46_v4  ;;  %v50_v13 = vperm.slane %v42_v8, 0  ;;  %v51_v17 = vperm.slane %v43_v11, 0  ;;  %v52_v21 = vperm.slane %v44_v16, 0  ;;  %v34_v4 = vld [vmem:[#allocation2 + $0x30] sm:$0xff] }
   0xc   :  { %v62_v12 = vsel %vm54_vm0, 1, %v275_v0  ;;  %vm56_vm1 = vcmp.lt.s32.totalorder %v38_v2, %v48_v9  ;;  %vm55_vm2 = vcmp.lt.s32.totalorder %v38_v2, %v47_v10  ;;  %vm57_vm4 = vcmp.lt.s32.totalorder %v38_v2, %v49_v14  ;;  %v35_v10 = vld [vmem:[#allocation2 + $0x38] sm:$0xff] }
   0xd   :  { %71 = vperm.xlu0 %217, %v62_v12   ;;  %v64_v15 = vsel %vm56_vm1, 1, %v275_v0  ;;  %vm58_vm3 = vcmp.lt.s32.totalorder %v38_v2, %v50_v13  ;;  %v63_v20 = vsel %vm55_vm2, 1, %v275_v0  ;;  %vm59_vm5 = vcmp.lt.s32.totalorder %v38_v2, %v51_v17 }
   0xe   :  { %77 = vperm.xlu1 %218, %v64_v15   ;;  %v66_v18 = vsel %vm58_vm3, 1, %v275_v0  ;;  %v65_v22 = vsel %vm57_vm4, 1, %v275_v0  ;;  %v53_v23 = vperm.slane %v45_v19, 0  ;;  %v67_v24 = vsel %vm59_vm5, 1, %v275_v0 }
   0xf   :  { %83 = vperm.xlu2 %219, %v66_v18   ;;  %vm60_vm6 = vcmp.lt.s32.totalorder %v38_v2, %v52_v21  ;;  %vm175_vm0 = vcmask 1041409   ;;  %vm177_vm2 = vcmask 1042434   ;;  %vm179_vm3 = vcmask 1043459  }
  0x10   :  { %vm61_vm7 = vcmp.lt.s32.totalorder %v38_v2, %v53_v23  ;;  %v68_v25 = vsel %vm60_vm6, 1, %v275_v0  ;;  %vm181_vm4 = vcmask 1044484   ;;  %vm183_vm5 = vcmask 1045509  }
  0x11   :  { %v69_v26 = vsel %vm61_vm7, 1, %v275_v0  ;;  %vm185_vm6 = vcmask 1046534   ;;  %vm187_vm7 = vcmask 1047559  }
  0x15   :  { %74 = vperm.xlu0 %217, %v63_v20  }
  0x16   :  { %80 = vperm.xlu1 %218, %v65_v22  }
  0x17   :  { %86 = vperm.xlu2 %219, %v67_v24  }
  0x1d   :  { %89 = vperm.xlu0 %217, %v68_v25  }
  0x1e   :  { %92 = vperm.xlu1 %218, %v69_v26  }
  0x69   :  { %v84_v27 = vpop.permute.xlu2 %83 }
  0x6a   :  { %vm98_vm8 = vcmp.eq.s32.totalorder %v84_v27, 1 }
  0x6b   :  { %v106_v29 = vsel %vm98_vm8, %v32_v28, 0.0 }
  0x6c   :  { %v139_v32 = vsel %vm110_vm9, %v106_v29, 0.0 }
  0x6d   :  { %v140_v38 = vrot.slane %v139_v32, 4 }
  0x6f   :  { %v141_v47 = vadd.f32 %v140_v38, %v139_v32 }
  0x71   :  { %v87_v30 = vpop.permute.xlu2 %86  ;;  %v142_v56 = vrot.slane %v141_v47, 2 }
  0x72   :  { %vm99_vm10 = vcmp.eq.s32.totalorder %v87_v30, 1 }
  0x73   :  { %v107_v40 = vsel %vm99_vm10, %v33_v34, 0.0  ;;  %v143_v2 = vadd.f32 %v142_v56, %v141_v47 }
  0x74   :  { %v146_v45 = vsel %vm110_vm9, %v107_v40, 0.0 }
  0x75   :  { %v147_v52 = vrot.slane %v146_v45, 4  ;;  %v144_v15 = vrot.slane %v143_v2, 1 }
  0x77   :  { %v148_v62 = vadd.f32 %v147_v52, %v146_v45 }
  0x79   :  { %v149_v9 = vrot.slane %v148_v62, 2 }
  0x7b   :  { %v150_v23 = vadd.f32 %v149_v9, %v148_v62 }
  0x7d   :  { %v151_v34 = vrot.slane %v150_v23, 1 }
  0x7f   :  { %v72_v33 = vpop.permute.xlu0 %71 }
  0x80   :  { %vm94_vm11 = vcmp.eq.s32.totalorder %v72_v33, 1  ;;  %v78_v37 = vpop.permute.xlu1 %77 }
  0x81   :  { %v102_v36 = vsel %vm94_vm11, %v28_v31, 0.0  ;;  %vm96_vm12 = vcmp.eq.s32.totalorder %v78_v37, 1 }
  0x82   :  { %v111_v39 = vsel %vm110_vm9, %v102_v36, 0.0  ;;  %v104_v42 = vsel %vm96_vm12, %v30_v35, 0.0  ;;  %v145_v36 = vadd.f32 %v144_v15, %v143_v2 }
  0x83   :  { %v112_v41 = vrot.slane %v111_v39, 4  ;;  %v125_v43 = vsel %vm110_vm9, %v104_v42, 0.0 }
  0x84   :  { %v126_v46 = vrot.slane %v125_v43, 4 }
  0x85   :  { %v113_v44 = vadd.f32 %v112_v41, %v111_v39 }
  0x86   :  { %v127_v49 = vadd.f32 %v126_v46, %v125_v43  ;;  %v152_v43 = vadd.f32 %v151_v34, %v150_v23 }
  0x87   :  { %v75_v50 = vpop.permute.xlu0 %74  ;;  %v114_v51 = vrot.slane %v113_v44, 2 }
  0x88   :  { %vm95_vm13 = vcmp.eq.s32.totalorder %v75_v50, 1  ;;  %v81_v55 = vpop.permute.xlu1 %80  ;;  %v128_v57 = vrot.slane %v127_v49, 2 }
  0x89   :  { %v103_v54 = vsel %vm95_vm13, %v29_v48, 0.0  ;;  %vm97_vm14 = vcmp.eq.s32.totalorder %v81_v55, 1  ;;  %v115_v61 = vadd.f32 %v114_v51, %v113_v44 }
  0x8a   :  { %v118_v58 = vsel %vm110_vm9, %v103_v54, 0.0  ;;  %v105_v60 = vsel %vm97_vm14, %v31_v53, 0.0  ;;  %v129_v3 = vadd.f32 %v128_v57, %v127_v49 }
  0x8b   :  { %v119_v59 = vrot.slane %v118_v58, 4  ;;  %v132_v63 = vsel %vm110_vm9, %v105_v60, 0.0  ;;  %v116_v8 = vrot.slane %v115_v61, 1 }
  0x8c   :  { %v133_v1 = vrot.slane %v132_v63, 4  ;;  %v130_v16 = vrot.slane %v129_v3, 1 }
  0x8d   :  { %v120_v0 = vadd.f32 %v119_v59, %v118_v58  ;;  %v117_v22 = vadd.f32 %v116_v8, %v115_v61 }
  0x8e   :  { %v134_v6 = vadd.f32 %v133_v1, %v132_v63  ;;  %v131_v29 = vadd.f32 %v130_v16, %v129_v3 }
  0x8f   :  { %v121_v5 = vrot.slane %v120_v0, 2  ;;  %v90_v7 = vpop.permute.xlu0 %89 }
  0x90   :  { %vm100_vm15 = vcmp.eq.s32.totalorder %v90_v7, 1  ;;  %v135_v12 = vrot.slane %v134_v6, 2  ;;  %v93_v14 = vpop.permute.xlu1 %92 }
  0x91   :  { %v122_v11 = vadd.f32 %v121_v5, %v120_v0  ;;  %v108_v13 = vsel %vm100_vm15, %v34_v4, 0.0  ;;  %vm101_vm1 = vcmp.eq.s32.totalorder %v93_v14, 1 }
  0x92   :  { %v153_v17 = vsel %vm110_vm9, %v108_v13, 0.0  ;;  %v136_v19 = vadd.f32 %v135_v12, %v134_v6  ;;  %v109_v21 = vsel %vm101_vm1, %v35_v10, 0.0 }
  0x93   :  { %v123_v18 = vrot.slane %v122_v11, 1  ;;  %v154_v20 = vrot.slane %v153_v17, 4  ;;  %v160_v24 = vsel %vm110_vm9, %v109_v21, 0.0 }
  0x94   :  { %v137_v26 = vrot.slane %v136_v19, 1  ;;  %v161_v28 = vrot.slane %v160_v24, 4 }
  0x95   :  { %v124_v25 = vadd.f32 %v123_v18, %v122_v11  ;;  %v155_v27 = vadd.f32 %v154_v20, %v153_v17 }
  0x96   :  { %v138_v31 = vadd.f32 %v137_v26, %v136_v19  ;;  %v162_v33 = vadd.f32 %v161_v28, %v160_v24 }
  0x97   :  { %v176_v30 = vsel %vm175_vm0, %v124_v25, %v117_v22  ;;  %v156_v32 = vrot.slane %v155_v27, 2 }
  0x98   :  { %v178_v35 = vsel %vm177_vm2, %v131_v29, %v176_v30  ;;  %v163_v39 = vrot.slane %v162_v33, 2 }
  0x99   :  { %v180_v37 = vsel %vm179_vm3, %v138_v31, %v178_v35  ;;  %v157_v38 = vadd.f32 %v156_v32, %v155_v27 }
  0x9a   :  { %v182_v40 = vsel %vm181_vm4, %v145_v36, %v180_v37  ;;  %v164_v42 = vadd.f32 %v163_v39, %v162_v33 }
  0x9b   :  { %v158_v41 = vrot.slane %v157_v38, 1  ;;  %v184_v46 = vsel %vm183_vm5, %v152_v43, %v182_v40 }
  0x9c   :  { %v165_v45 = vrot.slane %v164_v42, 1 }
  0x9d   :  { %v159_v44 = vadd.f32 %v158_v41, %v157_v38 }
  0x9e   :  { %v166_v48 = vadd.f32 %v165_v45, %v164_v42 }
  0x9f   :  { %v186_v47 = vsel %vm185_vm6, %v159_v44, %v184_v46 }
  0xa0   :  { %v188_v49 = vsel %vm187_vm7, %v166_v48, %v186_v47 }
  0xa1   :  { %190 = vst.msk [vmem:[#allocation5] sm:$0xff] %vm110_vm9, %v188_v49 }
  0xa2   :  { %194 = vsyncadd [#allocation4], 96  ;;  %s197_s18 = sshll.u32 %s315_s2, 4  ;;  %s276_s19 = smov [#allocation5]   ;;  %s198_s18 = int_to_ptr.hbm [resolvable:$true] %s197_s18 }
  0xa3   :  { %s195_s20 = sshll.u32 %s276_s19, 4  ;;  %s277_s21 = smov 32   ;;  %s196_s20 = int_to_ptr.vmem [resolvable:$true] %s195_s20 }
  0xa4   :  { %s278_s22 = smov 2  }
  0xa5   :  { %203 = dma.vmem_to_hbm [thread:$0]  %s196_s20, 32, %s198_s18, [#allocation4], %s277_s21, %s277_s21, %s278_s22  }
  0xa6   :  { %270 = dma.done.wait [#allocation4], 128  }
  0xa7   :  { %271 = vsyncadd [#allocation4], 4294967168 }
  0xa8   :  { %208 = vsyncpa [#allocation3], 1 }
  0xa9   :  { %209 = vsyncpa [#allocation4], 1 }

</bundles_post_ra>
